<compile_context>
chip_gen: v7x
topology: tpu7x:2x2x1
jax: 0.10.0
libtpu: 0.0.40
codegen_flags: <defaults>
</compile_context>

<pallas_src>
import jax
import jax.numpy as jnp
from jax.experimental import pallas as pl
from jax.experimental.pallas import tpu as pltpu


def bnn_kernel(x_ref, w1_ref, b1_ref, w2_ref, b2_ref, w3_ref, o_ref):
    # Shapes (batch on lanes, features on sublanes):
    #   x_ref : (1, tb)    w1_ref: (32, 1)   b1_ref: (32, 1)
    #   w2_ref: (32, 32)   b2_ref: (32, 1)   w3_ref: (32, 1)
    #   o_ref : (1, tb)
    x = x_ref[...]                                              # (1, tb)

    # Layer 1: K=1 "matmul" == outer product -> pure VPU broadcast, no MXU trip.
    h1 = jnp.tanh(w1_ref[...] * x + b1_ref[...])                # (32, tb)

    # Layer 2: the only real matmul -> MXU with f32 accumulation.
    h2 = jnp.tanh(
        jnp.dot(w2_ref[...], h1, preferred_element_type=jnp.float32)
        + b2_ref[...]
    )                                                           # (32, tb)

    # Layer 3 (no bias, single output unit): VPU multiply + XLU sublane reduce
    # instead of an M=1 MXU matmul.  Result is a lane-dense (1, tb) store.
    o_ref[...] = jnp.sum(w3_ref[...] * h2, axis=0, keepdims=True)


def bnn_forward(x, w1, b1, w2, b2, w3, *, tile_b=512):
    """Forward pass of the 1 -> 32 -> 32 -> 1 tanh MLP.

    Args (PyTorch nn.Linear layouts):
      x  : (B, 1) float32
      w1 : (32, 1),  b1: (32,)
      w2 : (32, 32), b2: (32,)
      w3 : (1, 32)            (bias-free)
    Returns: (B, 1) float32
    """
    B = x.shape[0]
    H1 = w1.shape[0]
    H2 = w2.shape[0]
    lane = 128

    # Lane-dense tiling along the batch axis.
    tb = max(lane, (int(tile_b) // lane) * lane)
    if B <= tb:
        # small batch: one grid step, minimal lane padding
        tb = max(lane, ((B + lane - 1) // lane) * lane)
    n_blocks = pl.cdiv(B, tb)
    B_pad = n_blocks * tb

    # (B, 1) -> (1, B_pad): batch on lanes.
    x_t = jnp.asarray(x, jnp.float32).reshape(1, B)
    if B_pad != B:
        x_t = jnp.pad(x_t, ((0, 0), (0, B_pad - B)))

    # Weights stay in PyTorch (out, in) layout; biases/column weights as
    # (out, 1) so they broadcast across lanes inside the kernel.
    w1c = jnp.asarray(w1, jnp.float32).reshape(H1, 1)
    b1c = jnp.asarray(b1, jnp.float32).reshape(H1, 1)
    w2m = jnp.asarray(w2, jnp.float32)                    # (32, 32)
    b2c = jnp.asarray(b2, jnp.float32).reshape(H2, 1)
    w3c = jnp.asarray(w3, jnp.float32).reshape(H2, 1)     # (1,32) -> (32,1)

    def const_spec(shape):
        # Constant block index -> single resident copy, no per-step re-DMA.
        return pl.BlockSpec(shape, lambda i: (0, 0))

    out_t = pl.pallas_call(
        bnn_kernel,
        out_shape=jax.ShapeDtypeStruct((1, B_pad), jnp.float32),
        grid_spec=pltpu.PrefetchScalarGridSpec(
            num_scalar_prefetch=0,
            grid=(n_blocks,),
            in_specs=[
                pl.BlockSpec((1, tb), lambda i: (0, i)),   # x, batch-tiled on lanes
                const_spec(w1c.shape),
                const_spec(b1c.shape),
                const_spec(w2m.shape),
                const_spec(b2c.shape),
                const_spec(w3c.shape),
            ],
            out_specs=pl.BlockSpec((1, tb), lambda i: (0, i)),
        ),
        compiler_params=pltpu.CompilerParams(
            dimension_semantics=("parallel",),   # shards batch grid across TCs
        ),
    )(x_t, w1c, b1c, w2m, b2c, w3c)

    # Drop lane padding and return in the PyTorch (B, 1) convention.
    return out_t[:, :B].reshape(B, 1)


def init_linear(key, fan_in, fan_out, bias=True):
    """nn.Linear-style U(-1/sqrt(fan_in), 1/sqrt(fan_in)) init, (out, in) layout."""
    bound = 1.0 / jnp.sqrt(jnp.float32(fan_in))
    kw, kb = jax.random.split(key)
    w = jax.random.uniform(kw, (fan_out, fan_in), jnp.float32, -bound, bound)
    b = (jax.random.uniform(kb, (fan_out,), jnp.float32, -bound, bound)
         if bias else None)
    return w, b


if __name__ == "__main__":
    # BNN dims from __init__: 1 -> 32 -> 32 -> 1
    key = jax.random.PRNGKey(0)
    k_x, k1, k2, k3 = jax.random.split(key, 4)

    # Ragged batch on purpose: exercises lane padding and a 2-step grid
    # (1000 -> padded to 1024 with tile_b=512).
    batch = 1000
    x = jax.random.normal(k_x, (batch, 1), jnp.float32)

    w1, b1 = init_linear(k1, 1, 32, bias=True)
    w2, b2 = init_linear(k2, 32, 32, bias=True)
    w3, _ = init_linear(k3, 32, 1, bias=False)

    out = bnn_forward(x, w1, b1, w2, b2, w3, tile_b=512)
    out = jax.block_until_ready(out)

    # Pure-JAX reference of the same PyTorch forward semantics.
    ref = jnp.tanh(x @ w1.T + b1)
    ref = jnp.tanh(ref @ w2.T + b2)
    ref = ref @ w3.T
    assert out.shape == (batch, 1)
    assert jnp.allclose(out, ref, atol=1e-5, rtol=1e-5)

    # Also check the tiny-batch / single-tile path.
    out_small = jax.block_until_ready(
        bnn_forward(x[:16], w1, b1, w2, b2, w3, tile_b=512))
    assert jnp.allclose(out_small, ref[:16], atol=1e-5, rtol=1e-5)

    print("KERNEL_OK")
</pallas_src>

<mosaic_0001>
module attributes {stable_mosaic.version = 11 : i64} {
  func.func @bnn_kernel(%arg0: i32, %arg1: memref<1x512xf32, #tpu.memory_space<vmem>>, %arg2: memref<32x1xf32, #tpu.memory_space<vmem>>, %arg3: memref<32x1xf32, #tpu.memory_space<vmem>>, %arg4: memref<32x32xf32, #tpu.memory_space<vmem>>, %arg5: memref<32x1xf32, #tpu.memory_space<vmem>>, %arg6: memref<32x1xf32, #tpu.memory_space<vmem>>, %arg7: memref<1x512xf32, #tpu.memory_space<vmem>>) attributes {dimension_semantics = [#tpu.dimension_semantics<parallel>], iteration_bounds = array<i64: 2>, scalar_prefetch = 0 : i64, scratch_operands = 0 : i64, tpu.core_type = #tpu.core_type<tc>, window_params = [{transform_indices = @transform_0, window_bounds = array<i64: 1, 512>}, {pipeline_mode = #tpu.pipeline_mode<synchronous>, transform_indices = @transform_1, window_bounds = array<i64: 32, 1>}, {pipeline_mode = #tpu.pipeline_mode<synchronous>, transform_indices = @transform_2, window_bounds = array<i64: 32, 1>}, {pipeline_mode = #tpu.pipeline_mode<synchronous>, transform_indices = @transform_3, window_bounds = array<i64: 32, 32>}, {pipeline_mode = #tpu.pipeline_mode<synchronous>, transform_indices = @transform_4, window_bounds = array<i64: 32, 1>}, {pipeline_mode = #tpu.pipeline_mode<synchronous>, transform_indices = @transform_5, window_bounds = array<i64: 32, 1>}, {transform_indices = @transform_6, window_bounds = array<i64: 1, 512>}]} {
    %c0 = arith.constant 0 : index
    %c0_0 = arith.constant 0 : index
    %0 = vector.load %arg1[%c0, %c0_0] : memref<1x512xf32, #tpu.memory_space<vmem>>, vector<1x512xf32>
    %c0_1 = arith.constant 0 : index
    %c0_2 = arith.constant 0 : index
    %1 = vector.load %arg2[%c0_1, %c0_2] : memref<32x1xf32, #tpu.memory_space<vmem>>, vector<32x1xf32>
    %2 = vector.broadcast %1 : vector<32x1xf32> to vector<32x512xf32>
    %3 = vector.broadcast %0 : vector<1x512xf32> to vector<32x512xf32>
    %4 = arith.mulf %2, %3 : vector<32x512xf32>
    %c0_3 = arith.constant 0 : index
    %c0_4 = arith.constant 0 : index
    %5 = vector.load %arg3[%c0_3, %c0_4] : memref<32x1xf32, #tpu.memory_space<vmem>>, vector<32x1xf32>
    %6 = vector.broadcast %5 : vector<32x1xf32> to vector<32x512xf32>
    %7 = arith.addf %4, %6 : vector<32x512xf32>
    %8 = math.tanh %7 : vector<32x512xf32>
    %c0_5 = arith.constant 0 : index
    %c0_6 = arith.constant 0 : index
    %9 = vector.load %arg4[%c0_5, %c0_6] : memref<32x32xf32, #tpu.memory_space<vmem>>, vector<32x32xf32>
    %cst = arith.constant dense<0.000000e+00> : vector<32x512xf32>
    %10 = tpu.matmul %9, %8, %cst {dimension_numbers = #tpu.dot_dimension_numbers<[1], [0], [0], [1], [0, 0, 1, 1], [], []>} : vector<32x32xf32>, vector<32x512xf32>, vector<32x512xf32> -> vector<32x512xf32>
    %c0_7 = arith.constant 0 : index
    %c0_8 = arith.constant 0 : index
    %11 = vector.load %arg5[%c0_7, %c0_8] : memref<32x1xf32, #tpu.memory_space<vmem>>, vector<32x1xf32>
    %12 = vector.broadcast %11 : vector<32x1xf32> to vector<32x512xf32>
    %13 = arith.addf %10, %12 : vector<32x512xf32>
    %14 = math.tanh %13 : vector<32x512xf32>
    %c0_9 = arith.constant 0 : index
    %c0_10 = arith.constant 0 : index
    %15 = vector.load %arg6[%c0_9, %c0_10] : memref<32x1xf32, #tpu.memory_space<vmem>>, vector<32x1xf32>
    %16 = vector.broadcast %15 : vector<32x1xf32> to vector<32x512xf32>
    %17 = arith.mulf %16, %14 : vector<32x512xf32>
    %cst_11 = arith.constant dense<0.000000e+00> : vector<512xf32>
    %18 = vector.multi_reduction <add>, %17, %cst_11 [0] : vector<32x512xf32> to vector<512xf32>
    %19 = vector.shape_cast %18 : vector<512xf32> to vector<1x512xf32>
    %c0_12 = arith.constant 0 : index
    %c0_13 = arith.constant 0 : index
    %20 = vector.load %arg7[%c0_12, %c0_13] : memref<1x512xf32, #tpu.memory_space<vmem>>, vector<1x512xf32>
    tpu.vector_store %arg7[%c0_12, %c0_13], %19 {strides = array<i32>} : memref<1x512xf32, #tpu.memory_space<vmem>>, vector<1x512xf32>,
    return
  }
  func.func @transform_0(%arg0: i32) -> (i32, i32) {
    %c0_i32 = arith.constant 0 : i32
    %c0_i32_0 = arith.constant 0 : i32
    return %c0_i32, %arg0 : i32, i32
  }
  func.func @transform_1(%arg0: i32) -> (i32, i32) {
    %c0_i32 = arith.constant 0 : i32
    %c0_i32_0 = arith.constant 0 : i32
    %c0_i32_1 = arith.constant 0 : i32
    return %c0_i32, %c0_i32_0 : i32, i32
  }
  func.func @transform_2(%arg0: i32) -> (i32, i32) {
    %c0_i32 = arith.constant 0 : i32
    %c0_i32_0 = arith.constant 0 : i32
    %c0_i32_1 = arith.constant 0 : i32
    return %c0_i32, %c0_i32_0 : i32, i32
  }
  func.func @transform_3(%arg0: i32) -> (i32, i32) {
    %c0_i32 = arith.constant 0 : i32
    %c0_i32_0 = arith.constant 0 : i32
    %c0_i32_1 = arith.constant 0 : i32
    return %c0_i32, %c0_i32_0 : i32, i32
  }
  func.func @transform_4(%arg0: i32) -> (i32, i32) {
    %c0_i32 = arith.constant 0 : i32
    %c0_i32_0 = arith.constant 0 : i32
    %c0_i32_1 = arith.constant 0 : i32
    return %c0_i32, %c0_i32_0 : i32, i32
  }
  func.func @transform_5(%arg0: i32) -> (i32, i32) {
    %c0_i32 = arith.constant 0 : i32
    %c0_i32_0 = arith.constant 0 : i32
    %c0_i32_1 = arith.constant 0 : i32
    return %c0_i32, %c0_i32_0 : i32, i32
  }
  func.func @transform_6(%arg0: i32) -> (i32, i32) {
    %c0_i32 = arith.constant 0 : i32
    %c0_i32_0 = arith.constant 0 : i32
    return %c0_i32, %arg0 : i32, i32
  }
}

</mosaic_0001>

<bundles_post_ra>
// kernel: tpu_custom_call.1
= control target key start
LH: loop header
LB: loop body
LE: loop exit
PB: predicated region body
PF: predicated region fallthrough
CT: control target
= control target key end

     0   :  { %11 = vsyncpa [#allocation3], 0  ;;  %s1215_s0 = inlined_call_operand.vmem [shape: f32[1,1024], index: 0, kind: input, shape index: {}]   ;;  %s1216_s1 = inlined_call_operand.vmem [shape: f32[32,1], index: 1, kind: input, shape index: {}]   ;;  %s1217_s2 = inlined_call_operand.vmem [shape: f32[32,1], index: 2, kind: input, shape index: {}]   ;;  %s1218_s3 = inlined_call_operand.vmem [shape: f32[32,32], index: 3, kind: input, shape index: {}]   ;;  %s1219_s4 = inlined_call_operand.vmem [shape: f32[32,1], index: 4, kind: input, shape index: {}]   ;;  %s1220_s5 = inlined_call_operand.vmem [shape: f32[32,1], index: 5, kind: input, shape index: {}]   ;;  %s1221_s6 = inlined_call_operand.hbm [shape: f32[1,1024], index: 6, kind: output, shape index: {}]  }
   0x1   :  { %13 = vsyncpa [#allocation3 + $0x1], 0  ;;  %s1031_s21 = smov 0   ;;  %s1033_s22 = smov 0  }
   0x2   :  { %s1035_s23 = smov 0   ;;  %s1037_s24 = smov 0  }
   0x3 LB: > { %s1052_s25 = sadd.s32 4294967295, %s990_s24   ;;  %s784_s26 = sadd.s32 4294967294, %s990_s24   ;;  %s990_s24 = sphi %s1037_s24, %s1227_s24   ;;  %s986_s23 = sphi %s1035_s23, %s1226_s23   ;;  %s982_s22 = sphi %s1033_s22, %s1225_s22   ;;  %s978_s21 = sphi %s1031_s21, %s1224_s21  }
   0x4   : > { %s1056_s27 = sadd.s32 1, %s990_s24   ;;  %s157_s28 = sadd.s32 1, %s986_s23 }
   0x5   : > { %s154_s29 = ssub.s32 %s990_s24, %s1056_s27  ;;  %p167_p0 = scmp.ne.s32.totalorder %s986_s23, %s982_s22 }
   0x6   : > { %p155_p1 = scmp.eq.s32.totalorder %s154_s29, 0  ;;  %p168_p2 = scmp.eq.s32.totalorder %s1052_s25, 1 }
   0x7   : > { %p173_p3 = scmp.ne.s32.totalorder %s982_s22, %s978_s21  ;;  %p174_p4 = scmp.eq.s32.totalorder %s784_s26, 1 }
   0x8   : > { %s1067_s30 = scalar_select %p155_p1, %s986_s23, %s157_s28  }
   0x9   : > { %p1069_p5 = por %p168_p2, %p167_p0  ;;  %p1073_p6 = por %p174_p4, %p173_p3 }
   0xa   : > { %p787_p7 = scmp.ge.s32.totalorder %s990_s24, 1  ;;  %p215_p8 = scmp.lt.s32.totalorder %s990_s24, 3 }
   0xc   : > { %p216_p9 = pnand %p787_p7, %p215_p8 }
   0xd   : > { %v312_v0 = vld [vmem:[%s1217_s2] sm:$0xff] (!%p216_p9)  ;;  %v992_v2 = vmov (!%p216_p9), 0   ;;  %v313_v3 = vld [vmem:[%s1217_s2 + $0x8] sm:$0xff] (!%p216_p9)  ;;  %v254_v5 = vld [vmem:[%s1216_s1 + $0x18] sm:$0xff] (!%p216_p9)  ;;  %v993_v17 = vmov (!%p216_p9), 0.0   ;;  %s789_s11 = sshll.u32 (!%p216_p9), %s1052_s25, 2  ;;  %v276_v18 = vlaneseq (!%p216_p9) }
   0xe   : > { %219 = sbr.rel (%p216_p9) target bundleno = 457 (0x1c9), region = 44  ;;  %v251_v1 = vld [vmem:[%s1216_s1] sm:$0xff] (!%p216_p9)  ;;  %863 = vset.pattern.permute.xlu1 (!%p216_p9), %v992_v2  ;;  %862 = vset.pattern.permute.xlu0 (!%p216_p9), %v992_v2  ;;  %v252_v4 = vld [vmem:[%s1216_s1 + $0x8] sm:$0xff] (!%p216_p9)  ;;  %v253_v6 = vld [vmem:[%s1216_s1 + $0x10] sm:$0xff] (!%p216_p9)  ;;  %p245_p10 = scmp.lt.s32.totalorder (!%p216_p9), %s789_s11, 7  ;;  %vm396_vm0 = vcmask (!%p216_p9), 261120  }
   0xf   : > { %318 = vperm.xlu1 (!%p216_p9), %863, %v312_v0   ;;  %257 = vperm.xlu0 (!%p216_p9), %862, %v251_v1   ;;  %v315_v7 = vld [vmem:[%s1217_s2 + $0x18] sm:$0xff] (!%p216_p9)  ;;  %v314_v8 = vld [vmem:[%s1217_s2 + $0x10] sm:$0xff] (!%p216_p9)  ;;  %v373_v9 = vld [vmem:[%s1219_s4 + $0x8] sm:$0xff] (!%p216_p9)  ;;  %v1131_v19 = vshrl.u32 (!%p216_p9), %v276_v18, 7  ;;  %s241_s29 = sand.u32 (!%p216_p9), 1, %s982_s22   ;;  %s803_s10 = sshll.u32 (!%p216_p9), %s1052_s25, 6 }
  0x10   : > { %v372_v10 = vld [vmem:[%s1219_s4] sm:$0xff] (!%p216_p9)  ;;  %v375_v11 = vld [vmem:[%s1219_s4 + $0x18] sm:$0xff] (!%p216_p9)  ;;  %v374_v12 = vld [vmem:[%s1219_s4 + $0x10] sm:$0xff] (!%p216_p9)  ;;  %473 = vmatprep.mubr.f32.mxu0 (!%p216_p9), %v993_v17  ;;  %562 = vmatprep.mubr.f32.mxu1 (!%p216_p9), %v993_v17  ;;  %s788_s9 = sshll.u32 (!%p216_p9), %s241_s29, 2  ;;  %vm710_vm1 = vcmp.lt.s32.totalorder (!%p216_p9), %v276_v18, 512  ;;  %s1173_s15 = scalar_lea.hbm (!%p216_p9), %s1221_s6, %s803_s10 }
  0x11   : > { %v604_v13 = vld [vmem:[%s1220_s5 + $0x8] sm:$0xff] (!%p216_p9)  ;;  %v603_v14 = vld [vmem:[%s1220_s5] sm:$0xff] (!%p216_p9)  ;;  %v606_v15 = vld [vmem:[%s1220_s5 + $0x18] sm:$0xff] (!%p216_p9)  ;;  %v278_v20 = vsub.s32 (!%p216_p9), 0, %v1131_v19  ;;  %v282_v21 = vsub.s32 (!%p216_p9), 1, %v1131_v19  ;;  %v286_v22 = vsub.s32 (!%p216_p9), 2, %v1131_v19 }
  0x12   : > { %v605_v16 = vld [vmem:[%s1220_s5 + $0x10] sm:$0xff] (!%p216_p9)  ;;  %v290_v23 = vsub.s32 (!%p216_p9), 3, %v1131_v19  ;;  %s714_s16 = scalar_lea.sflag (!%p216_p9), [#allocation3], %s241_s29  ;;  %s995_s25 = smov (!%p216_p9), [#allocation2]  }
  0x13   : > { %323 = vperm.xlu1 (!%p216_p9), %863, %v313_v3   ;;  %262 = vperm.xlu0 (!%p216_p9), %862, %v252_v4   ;;  %s932_s18 = sshll.u32 (!%p216_p9), %s995_s25, 4  ;;  %s933_s18 = int_to_ptr.vmem [resolvable:$false] %s932_s18 }
  0x14   : > { %s934_s19 = scalar_lea.vmem (!%p216_p9), %s933_s18, 128 }
  0x15   : > { %s1229_s11 = smov (!%p245_p10, %s789_s11), 7 }
  0x16   : > { %s247_s14 = scalar_lea.vmem %s1215_s0, %s1229_s11  ;;  %s243_s11 = scalar_lea.vmem [#allocation2], %s788_s9 }
  0x17   : > { %272 = vperm.xlu1 %863, %v254_v5   ;;  %267 = vperm.xlu0 %862, %v253_v6   ;;  %v250_v24 = vld [vmem:[%s247_s14] sm:$0xf]  ;;  %s728_s12 = sshll.u32 %s243_s11, 4  ;;  %s1175_s12 = int_to_ptr.vmem [resolvable:$true] %s728_s12 }
  0x18   : > { %v279_v25 = vrot.slane %v250_v24, %v278_v20  ;;  %v283_v26 = vrot.slane %v250_v24, %v282_v21  ;;  %v287_v27 = vrot.slane %v250_v24, %v286_v22  ;;  %v291_v28 = vrot.slane %v250_v24, %v290_v23  ;;  %s928_s17 = scalar_lea.vmem %s1175_s12, 64  ;;  %p935_p0 = scmp.lt.s32.totalorder %s1175_s12, %s933_s18 }
  0x19   : > { %p929_p11 = scmp.ne.s32.totalorder %s1175_s12, %s928_s17  ;;  %p936_p1 = scmp.lt.s32.totalorder %s934_s19, %s928_s17 }
  0x1b   : > { %333 = vperm.xlu1 %863, %v315_v7   ;;  %328 = vperm.xlu0 %862, %v314_v8   ;;  %p930_p12 = pnand %p929_p11, %p1069_p5  ;;  %p937_p2 = por %p936_p1, %p935_p0 }
  0x1d   : > { %p931_p13 = pneg %p930_p12 }
  0x1f   : > { %383 = vperm.xlu1 %863, %v373_v9   ;;  %378 = vperm.xlu0 %862, %v372_v10   ;;  %p938_p3 = pnand %p937_p2, %p931_p13 }
  0x23   : > { %393 = vperm.xlu1 %863, %v375_v11   ;;  %388 = vperm.xlu0 %862, %v374_v12  }
  0x27   : > { %614 = vperm.xlu1 %863, %v604_v13   ;;  %609 = vperm.xlu0 %862, %v603_v14  }
  0x2b   : > { %624 = vperm.xlu1 %863, %v606_v15   ;;  %619 = vperm.xlu0 %862, %v605_v16  }
  0x8e   : > { %v319_v29 = vpop.permute.xlu1 %318  ;;  %v258_v30 = vpop.permute.xlu0 %257 }
  0x8f   : > { %v296_v31 = vmul.f32 %v279_v25, %v258_v30  ;;  %v297_v32 = vmul.f32 %v283_v26, %v258_v30  ;;  %v298_v33 = vmul.f32 %v287_v27, %v258_v30  ;;  %v299_v34 = vmul.f32 %v291_v28, %v258_v30 }
  0x91   : > { %v336_v35 = vadd.f32 %v319_v29, %v296_v31  ;;  %v337_v36 = vadd.f32 %v319_v29, %v297_v32  ;;  %v338_v37 = vadd.f32 %v319_v29, %v298_v33  ;;  %v339_v38 = vadd.f32 %v319_v29, %v299_v34  ;;  %v368_v32 = vld [vmem:[%s1218_s3] sm:$0xff]  ;;  %v369_v33 = vld [vmem:[%s1218_s3 + $0x8] sm:$0xff]  ;;  %v370_v34 = vld [vmem:[%s1218_s3 + $0x10] sm:$0xff] }
  0x92   : > { %v324_v39 = vpop.permute.xlu1 %323  ;;  %v263_v40 = vpop.permute.xlu0 %262 }
  0x93   : > { %864 = vtanh.f32 %v336_v35  ;;  %v300_v41 = vmul.f32 %v279_v25, %v263_v40  ;;  %v301_v42 = vmul.f32 %v283_v26, %v263_v40  ;;  %v302_v43 = vmul.f32 %v287_v27, %v263_v40  ;;  %v371_v35 = vld [vmem:[%s1218_s3 + $0x18] sm:$0xff] }
  0x94   : > { %866 = vtanh.f32 %v337_v36  ;;  %v303_v44 = vmul.f32 %v291_v28, %v263_v40 }
  0x95   : > { %868 = vtanh.f32 %v338_v37  ;;  %v340_v45 = vadd.f32 %v324_v39, %v300_v41  ;;  %v341_v46 = vadd.f32 %v324_v39, %v301_v42  ;;  %v342_v47 = vadd.f32 %v324_v39, %v302_v43 }
  0x96   : > { %870 = vtanh.f32 %v339_v38  ;;  %v343_v48 = vadd.f32 %v324_v39, %v303_v44  ;;  %v273_v49 = vpop.permute.xlu1 %272  ;;  %v268_v50 = vpop.permute.xlu0 %267 }
  0x97   : > { %872 = vtanh.f32 %v340_v45  ;;  %v308_v51 = vmul.f32 %v279_v25, %v273_v49  ;;  %v309_v52 = vmul.f32 %v283_v26, %v273_v49  ;;  %v310_v53 = vmul.f32 %v287_v27, %v273_v49 }
  0x98   : > { %874 = vtanh.f32 %v341_v46  ;;  %v311_v54 = vmul.f32 %v291_v28, %v273_v49  ;;  %v304_v57 = vmul.f32 %v279_v25, %v268_v50  ;;  %v305_v61 = vmul.f32 %v283_v26, %v268_v50 }
  0x99   : > { %876 = vtanh.f32 %v342_v47  ;;  %v306_v0 = vmul.f32 %v287_v27, %v268_v50  ;;  %v307_v3 = vmul.f32 %v291_v28, %v268_v50 }
  0x9a   : > { %878 = vtanh.f32 %v343_v48  ;;  %v334_v55 = vpop.permute.xlu1 %333  ;;  %v329_v56 = vpop.permute.xlu0 %328 }
  0x9b   : > { %v348_v58 = vadd.f32 %v334_v55, %v308_v51  ;;  %v349_v59 = vadd.f32 %v334_v55, %v309_v52  ;;  %v350_v60 = vadd.f32 %v334_v55, %v310_v53  ;;  %v351_v62 = vadd.f32 %v334_v55, %v311_v54 }
  0x9c   : > { %v344_v1 = vadd.f32 %v329_v56, %v304_v57  ;;  %v345_v4 = vadd.f32 %v329_v56, %v305_v61  ;;  %v346_v6 = vadd.f32 %v329_v56, %v306_v0  ;;  %v347_v8 = vadd.f32 %v329_v56, %v307_v3 }
  0x9d   : > { %v865_v63 = vpop.eup %864  ;;  %880 = vtanh.f32 %v348_v58 }
  0x9e   : > { %v867_v2 = vpop.eup %866  ;;  %882 = vtanh.f32 %v349_v59  ;;  %v379_v36 = vpop.permute.xlu0 %378 }
  0x9f   : > { %v869_v5 = vpop.eup %868  ;;  %884 = vtanh.f32 %v350_v60  ;;  %v384_v44 = vpop.permute.xlu1 %383 }
  0xa0   : > { %v871_v7 = vpop.eup %870  ;;  %886 = vtanh.f32 %v351_v62 }
  0xa1   : > { %v873_v9 = vpop.eup %872  ;;  %888 = vtanh.f32 %v344_v1 }
  0xa2   : > { %v875_v10 = vpop.eup %874  ;;  %890 = vtanh.f32 %v345_v4  ;;  %v806_v11 = vpack.c.bf16 %v873_v9, %v865_v63  ;;  %v389_v52 = vpop.permute.xlu0 %388 }
  0xa3   : > { %v877_v12 = vpop.eup %876  ;;  %892 = vtanh.f32 %v346_v6  ;;  %v804_v13 = vpack.c.bf16 %v875_v10, %v867_v2  ;;  %v394_v59 = vpop.permute.xlu1 %393 }
  0xa4   : > { %v879_v14 = vpop.eup %878  ;;  %894 = vtanh.f32 %v347_v8  ;;  %v814_v15 = vpack.c.bf16 %v877_v12, %v869_v5 }
  0xa5   : > { %805 = vmatprep.subr.bf16.mxu0 %v804_v13  ;;  %v812_v16 = vpack.c.bf16 %v879_v14, %v871_v7 }
  0xa6   : > { %807 = vmatpush1.bf16.msra.mxu0 %v806_v11  ;;  %v610_v7 = vpop.permute.xlu0 %609 }
  0xa7   : > { %v881_v20 = vpop.eup %880  ;;  %813 = vmatprep.subr.bf16.mxu1 %v812_v16  ;;  %v615_v13 = vpop.permute.xlu1 %614 }
  0xa8   : > { %v883_v21 = vpop.eup %882  ;;  %815 = vmatpush1.bf16.msra.mxu1 %v814_v15 }
  0xa9   : > { %v885_v22 = vpop.eup %884 }
  0xaa   : > { %v887_v23 = vpop.eup %886 }
  0xab   : > { %v889_v24 = vpop.eup %888 }
  0xac   : > { %v891_v25 = vpop.eup %890  ;;  %v810_v26 = vpack.c.bf16 %v881_v20, %v889_v24 }
  0xad   : > { %v893_v27 = vpop.eup %892  ;;  %v808_v28 = vpack.c.bf16 %v883_v21, %v891_v25 }
  0xae   : > { %v895_v29 = vpop.eup %894  ;;  %v818_v30 = vpack.c.bf16 %v885_v22, %v893_v27 }
  0xaf   : > { %809 = vmatprep.subr.bf16.mxu0 %v808_v28  ;;  %v816_v31 = vpack.c.bf16 %v887_v23, %v895_v29  ;;  %v620_v28 = vpop.permute.xlu0 %619 }
  0xb0   : > { %811 = vmatpush1.bf16.msra.mxu0 %v810_v26 }
  0xb1   : > { %817 = vmatprep.subr.bf16.mxu1 %v816_v31 }
  0xb2   : > { %819 = vmatpush1.bf16.msra.mxu1 %v818_v30 }
  0xb3   : > { %790 = vmatmul.mubr.msk.f32.vlgmr.msra.gmra.mrb[0].mxu0 %vm396_vm0, %v368_v32 }
  0xb4   : > { %479 = vmatprep.mubr.f32.mxu0 %v993_v17 }
  0xb5   : > { %794 = vmatmul.mubr.msk.f32.vlgmr.msra.gmra.mrb[0].mxu1 %vm396_vm0, %v368_v32 }
  0xb6   : > { %568 = vmatprep.mubr.f32.mxu1 %v993_v17 }
  0xb7   : > { %791 = vmatmul.mubr.msk.f32.gmra.mrb[2].mxu0 %vm396_vm0, %v369_v33 }
  0xb8   : > { %485 = vmatprep.mubr.f32.mxu0 %v993_v17 }
  0xb9   : > { %795 = vmatmul.mubr.msk.f32.gmra.mrb[2].mxu1 %vm396_vm0, %v369_v33 }
  0xba   : > { %574 = vmatprep.mubr.f32.mxu1 %v993_v17 }
  0xbb   : > { %792 = vmatmul.mubr.msk.f32.gmra.mrb[4].mxu0 %vm396_vm0, %v370_v34 }
  0xbc   : > { %491 = vmatprep.mubr.f32.mxu0 %v993_v17 }
  0xbd   : > { %796 = vmatmul.mubr.msk.f32.gmra.mrb[4].mxu1 %vm396_vm0, %v370_v34 }
  0xbe   : > { %580 = vmatprep.mubr.f32.mxu1 %v993_v17 }
  0xbf   : > { %793 = vmatmul.mubr.msk.f32.gmra.mrb[6].mxu0 %vm396_vm0, %v371_v35 }
  0xc1   : > { %797 = vmatmul.mubr.msk.f32.gmra.mrb[6].mxu1 %vm396_vm0, %v371_v35 }
 0x186   : > { %v475_v37 = vpop.f32.mrb[0].mxu0 }
 0x187   : > { %v476_v38 = vadd.f32 %v475_v37, %v379_v36  ;;  %v477_v39 = vpop.f32.mrb[1].mxu0 }
 0x188   : > { %v564_v40 = vpop.f32.mrb[0].mxu1  ;;  %v478_v41 = vadd.f32 %v477_v39, %v379_v36 }
 0x189   : > { %896 = vtanh.f32 %v476_v38  ;;  %v565_v42 = vadd.f32 %v564_v40, %v379_v36  ;;  %v566_v43 = vpop.f32.mrb[1].mxu1 }
 0x18a   : > { %898 = vtanh.f32 %v478_v41  ;;  %v567_v45 = vadd.f32 %v566_v43, %v379_v36  ;;  %v481_v46 = vpop.f32.mrb[2].mxu0 }
 0x18b   : > { %900 = vtanh.f32 %v565_v42  ;;  %v482_v47 = vadd.f32 %v481_v46, %v384_v44  ;;  %v483_v17 = vpop.f32.mrb[3].mxu0  ;;  %v625_v42 = vpop.permute.xlu1 %624 }
 0x18c   : > { %902 = vtanh.f32 %v567_v45  ;;  %v570_v48 = vpop.f32.mrb[2].mxu1  ;;  %v484_v49 = vadd.f32 %v483_v17, %v384_v44 }
 0x18d   : > { %904 = vtanh.f32 %v482_v47  ;;  %v571_v50 = vadd.f32 %v570_v48, %v384_v44  ;;  %v572_v51 = vpop.f32.mrb[3].mxu1 }
 0x18e   : > { %906 = vtanh.f32 %v484_v49  ;;  %v573_v53 = vadd.f32 %v572_v51, %v384_v44  ;;  %v487_v54 = vpop.f32.mrb[4].mxu0 }
 0x18f   : > { %908 = vtanh.f32 %v571_v50  ;;  %v488_v55 = vadd.f32 %v487_v54, %v389_v52  ;;  %v489_v56 = vpop.f32.mrb[5].mxu0 }
 0x190   : > { %910 = vtanh.f32 %v573_v53  ;;  %v576_v57 = vpop.f32.mrb[4].mxu1  ;;  %v490_v58 = vadd.f32 %v489_v56, %v389_v52 }
 0x191   : > { %912 = vtanh.f32 %v488_v55  ;;  %v577_v60 = vadd.f32 %v576_v57, %v389_v52  ;;  %v578_v61 = vpop.f32.mrb[5].mxu1 }
 0x192   : > { %914 = vtanh.f32 %v490_v58  ;;  %v579_v62 = vadd.f32 %v578_v61, %v389_v52  ;;  %v493_v63 = vpop.f32.mrb[6].mxu0 }
 0x193   : > { %v897_v0 = vpop.eup %896  ;;  %916 = vtanh.f32 %v577_v60  ;;  %v494_v1 = vadd.f32 %v493_v63, %v394_v59  ;;  %v495_v2 = vpop.f32.mrb[7].mxu0  ;;  %v994_v63 = vmov 1966171168  }
 0x194   : > { %v899_v3 = vpop.eup %898  ;;  %918 = vtanh.f32 %v579_v62  ;;  %v582_v4 = vpop.f32.mrb[6].mxu1  ;;  %v496_v5 = vadd.f32 %v495_v2, %v394_v59  ;;  %v627_v15 = vmul.f32 %v897_v0, %v610_v7  ;;  %v686_v0 = vunpack.c.l.s4 %v994_v63 }
 0x195   : > { %v901_v6 = vpop.eup %900  ;;  %920 = vtanh.f32 %v494_v1  ;;  %v583_v8 = vadd.f32 %v582_v4, %v394_v59  ;;  %v584_v9 = vpop.f32.mrb[7].mxu1  ;;  %v628_v21 = vmul.f32 %v899_v3, %v610_v7 }
 0x196   : > { %v903_v10 = vpop.eup %902  ;;  %922 = vtanh.f32 %v496_v5  ;;  %v585_v11 = vadd.f32 %v584_v9, %v394_v59  ;;  %v629_v24 = vmul.f32 %v901_v6, %v610_v7  ;;  %v687_v9 = vunpack.c.0.s8 %v686_v0 }
 0x197   : > { %v905_v12 = vpop.eup %904  ;;  %924 = vtanh.f32 %v583_v8  ;;  %v630_v29 = vmul.f32 %v903_v10, %v610_v7 }
 0x198   : > { %v907_v14 = vpop.eup %906  ;;  %v631_v16 = vmul.f32 %v905_v12, %v615_v13  ;;  %926 = vtanh.f32 %v585_v11 }
 0x199   : > { %v909_v20 = vpop.eup %908  ;;  %v632_v22 = vmul.f32 %v907_v14, %v615_v13 }
 0x19a   : > { %v911_v23 = vpop.eup %910  ;;  %v643_v25 = vadd.f32 %v631_v16, %v627_v15  ;;  %v633_v26 = vmul.f32 %v909_v20, %v615_v13 }
 0x19b   : > { %v913_v27 = vpop.eup %912  ;;  %v652_v30 = vadd.f32 %v632_v22, %v628_v21  ;;  %v634_v31 = vmul.f32 %v911_v23, %v615_v13  ;;  %v690_v21 = vsub.s32 %v687_v9, %v1131_v19 }
 0x19c   : > { %v915_v32 = vpop.eup %914  ;;  %v661_v33 = vadd.f32 %v633_v26, %v629_v24  ;;  %v635_v34 = vmul.f32 %v913_v27, %v620_v28 }
 0x19d   : > { %v917_v35 = vpop.eup %916  ;;  %v670_v36 = vadd.f32 %v634_v31, %v630_v29  ;;  %v636_v37 = vmul.f32 %v915_v32, %v620_v28 }
 0x19e   : > { %v919_v38 = vpop.eup %918  ;;  %v644_v39 = vadd.f32 %v643_v25, %v635_v34  ;;  %v637_v40 = vmul.f32 %v917_v35, %v620_v28 }
 0x19f   : > { %v921_v41 = vpop.eup %920  ;;  %v653_v43 = vadd.f32 %v652_v30, %v636_v37  ;;  %v638_v44 = vmul.f32 %v919_v38, %v620_v28 }
 0x1a0   : > { %v923_v45 = vpop.eup %922  ;;  %v662_v46 = vadd.f32 %v661_v33, %v637_v40  ;;  %v639_v47 = vmul.f32 %v921_v41, %v625_v42 }
 0x1a1   : > { %v925_v17 = vpop.eup %924  ;;  %v671_v48 = vadd.f32 %v670_v36, %v638_v44  ;;  %v640_v49 = vmul.f32 %v923_v45, %v625_v42 }
 0x1a2   : > { %v927_v50 = vpop.eup %926  ;;  %v645_v51 = vadd.f32 %v644_v39, %v639_v47  ;;  %v641_v52 = vmul.f32 %v925_v17, %v625_v42 }
 0x1a3   : > { %v654_v53 = vadd.f32 %v653_v43, %v640_v49  ;;  %v642_v54 = vmul.f32 %v927_v50, %v625_v42 }
 0x1a4   : > { %v646_v55 = vrot.slane %v645_v51, 4  ;;  %v663_v56 = vadd.f32 %v662_v46, %v641_v52 }
 0x1a5   : > { %v655_v57 = vrot.slane %v654_v53, 4  ;;  %v672_v58 = vadd.f32 %v671_v48, %v642_v54 }
 0x1a6   : > { %v647_v59 = vadd.f32 %v646_v55, %v645_v51  ;;  %v664_v60 = vrot.slane %v663_v56, 4 }
 0x1a7   : > { %v656_v61 = vadd.f32 %v655_v57, %v654_v53  ;;  %v673_v62 = vrot.slane %v672_v58, 4 }
 0x1a8   : > { %v648_v1 = vrot.slane %v647_v59, 2  ;;  %v665_v2 = vadd.f32 %v664_v60, %v663_v56 }
 0x1a9   : > { %v657_v3 = vrot.slane %v656_v61, 2  ;;  %v674_v4 = vadd.f32 %v673_v62, %v672_v58 }
 0x1aa   : > { %v666_v5 = vrot.slane %v665_v2, 2  ;;  %v649_v6 = vadd.f32 %v648_v1, %v647_v59 }
 0x1ab   : > { %v675_v7 = vrot.slane %v674_v4, 2  ;;  %v658_v8 = vadd.f32 %v657_v3, %v656_v61 }
 0x1ac   : > { %v650_v10 = vrot.slane %v649_v6, 1  ;;  %v667_v11 = vadd.f32 %v666_v5, %v665_v2 }
 0x1ad   : > { %v659_v12 = vrot.slane %v658_v8, 1  ;;  %v676_v13 = vadd.f32 %v675_v7, %v674_v4 }
 0x1ae   : > { %v651_v14 = vadd.f32 %v650_v10, %v649_v6  ;;  %v668_v15 = vrot.slane %v667_v11, 1 }
 0x1af   : > { %v660_v16 = vadd.f32 %v659_v12, %v658_v8  ;;  %v677_v20 = vrot.slane %v676_v13, 1 }
 0x1b0   : > { %v669_v22 = vadd.f32 %v668_v15, %v667_v11 }
 0x1b1   : > { %v678_v23 = vadd.f32 %v677_v20, %v676_v13  ;;  %v683_v24 = vcombine.low %v651_v14, %v660_v16 }
 0x1b3   : > { %v684_v25 = vcombine.low %v669_v22, %v678_v23  ;;  %v691_v26 = vrot.slane %v683_v24, %v690_v21 }
 0x1b5   : > { %v698_v27 = vrot.slane %v684_v25, %v690_v21 }
 0x1b7   : > { %v699_v28 = vcombine.low %v691_v26, %v698_v27 }
 0x1b9   : > { %v706_v29 = vrot.slane %v699_v28, %v690_v21 }
 0x1bb   : > { %712 = vst.msk [vmem:[%s243_s11] sm:$0xf] %vm710_vm1, %v706_v29 }
 0x1bc   : > { %941 = shalt.err (!%p938_p3)
}
 0x1bd   : > { %s942_s20 = scalar_lea.hbm %s1173_s15, 64  ;;  %s946_s29 = scalar_lea.hbm %s1221_s6, 128 }
 0x1be   : > { %p943_p4 = scmp.ne.s32.totalorder %s1173_s15, %s942_s20  ;;  %p947_p9 = scmp.lt.u32.totalorder %s1173_s15, %s1221_s6 }
 0x1bf   : > { %p948_p10 = scmp.lt.u32.totalorder %s946_s29, %s942_s20  ;;  %p950_p12 = scmp.lt.u32.totalorder %s942_s20, %s1173_s15 }
 0x1c0   : > { %p944_p7 = pnand %p943_p4, %p1069_p5 }
 0x1c1   : > { %p949_p11 = por %p948_p10, %p947_p9 }
 0x1c2   : > { %p945_p8 = pneg %p944_p7 }
 0x1c3   : > { %p951_p13 = por %p950_p12, %p949_p11 }
 0x1c5   : > { %p952_p0 = pnand %p951_p13, %p945_p8 }
 0x1c7   : > { %955 = shalt.err (!%p952_p0)
}
 0x1c8   : > { %820 = dma.vmem_to_hbm [thread:$0]  (%p1069_p5), %s1175_s12, 64, %s1173_s15, %s714_s16  }
 0x1c9 PF: > { %p826_p1 = scmp.ge.s32.totalorder %s990_s24, 2  ;;  %s740_s11 = sand.u32 1, %s978_s21  }
 0x1ca   : > { %s741_s13 = scalar_lea.sflag [#allocation3], %s740_s11 }
 0x1cb   : > { %p823_p2 = pnand %p826_p1, %p1073_p6 }
 0x1cd   : > { %973 = dma.done.wait (!%p823_p2), %s741_s13, 64  }
 0x1ce   : > { %975 = vsyncadd (!%p823_p2), %s741_s13, 4294967232  ;;  %p16_p3 = scmp.ge.s32.totalorder %s1056_s27, 4   ;;  %s1224_s21 = smov %s982_s22 }
 0x1cf   : > { %s1225_s22 = smov %s986_s23  ;;  %s1226_s23 = smov %s1067_s30 }
 0x1d0   : > { %s1227_s24 = smov %s1056_s27  ;;  %18 = sbr.rel (!%p16_p3) target bundleno = 3 (0x3), region = 79 }
 0x1d7   :  { %746 = vsyncpa [#allocation3], 1 }
 0x1d8   :  { %748 = vsyncpa [#allocation3 + $0x1], 1 }

</bundles_post_ra>
